<compile_context>
chip_gen: v7x
topology: tpu7x:2x2x1
jax: 0.10.0
libtpu: 0.0.40
codegen_flags: <defaults>
</compile_context>

<pallas_src>
import jax
import jax.numpy as jnp
from jax.experimental import pallas as pl
from jax.experimental.pallas import tpu as pltpu


def _round_up(x: int, m: int) -> int:
    return ((x + m - 1) // m) * m


# Sublane granularity by element size (f32 -> 8, bf16/f16 -> 16, int8/fp8 -> 32).
_SUBLANE_BY_ITEMSIZE = {4: 8, 2: 16, 1: 32}


def _identity_message_kernel(z_src_ref, z_dst_ref, raw_msg_ref, t_enc_ref, out_ref):
    md = z_src_ref.shape[-1]
    rd = raw_msg_ref.shape[-1]
    td = t_enc_ref.shape[-1]
    dt = out_ref.dtype
    # Direct column-range stores with static offsets — no in-kernel concatenate.
    # Casts (when input dtypes differ from the output dtype) ride the VPU under
    # the DMA; for matching dtypes they are no-ops.
    out_ref[:, 0:md] = z_src_ref[...].astype(dt)
    out_ref[:, md:2 * md] = z_dst_ref[...].astype(dt)
    out_ref[:, 2 * md:2 * md + rd] = raw_msg_ref[...].astype(dt)
    out_ref[:, 2 * md + rd:2 * md + rd + td] = t_enc_ref[...].astype(dt)


def identity_message(z_src, z_dst, raw_msg, t_enc, *, row_block: int = 8192):
    """Pallas implementation of IdentityMessage.forward.

    Args:
      z_src:   [N, memory_dim]
      z_dst:   [N, memory_dim]
      raw_msg: [N, raw_msg_dim]
      t_enc:   [N, time_dim]
      row_block: rows processed per grid step (tuning knob; 4096-8192 keeps the
        per-step pipeline overhead <10% on v5e/v6e/v7x while staying well under
        the default scoped VMEM limit).
    Returns:
      [N, 2*memory_dim + raw_msg_dim + time_dim]  (same layout as torch.cat)
    """
    n, memory_dim = z_src.shape
    assert z_dst.shape == (n, memory_dim)
    assert raw_msg.shape[0] == n and t_enc.shape[0] == n
    raw_msg_dim = raw_msg.shape[-1]
    time_dim = t_enc.shape[-1]
    out_channels = raw_msg_dim + 2 * memory_dim + time_dim

    # Output dtype follows jnp.concatenate promotion (== torch.cat for matching
    # dtypes). Inputs are NOT promoted in the wrapper — casting happens in-kernel.
    out_dtype = jnp.result_type(z_src.dtype, z_dst.dtype, raw_msg.dtype, t_enc.dtype)

    # Row granularity: the largest sublane requirement among all dtypes involved.
    sub = 8
    for dt in (z_src.dtype, z_dst.dtype, raw_msg.dtype, t_enc.dtype, out_dtype):
        itemsize = jnp.dtype(dt).itemsize
        assert itemsize in _SUBLANE_BY_ITEMSIZE, f"unsupported TPU dtype itemsize: {itemsize}"
        sub = max(sub, _SUBLANE_BY_ITEMSIZE[itemsize])

    # Row block: large for throughput, but never (much) larger than N.
    rb = min(row_block, _round_up(n, sub))
    rb = _round_up(rb, sub)

    # cdiv grid — no input padding; Pallas handles the ragged last block
    # (out-of-range rows are never written back to HBM).
    grid = (pl.cdiv(n, rb),)

    return pl.pallas_call(
        _identity_message_kernel,
        out_shape=jax.ShapeDtypeStruct((n, out_channels), out_dtype),
        grid_spec=pltpu.PrefetchScalarGridSpec(
            num_scalar_prefetch=0,
            grid=grid,
            in_specs=[
                pl.BlockSpec((rb, memory_dim), lambda i: (i, 0)),
                pl.BlockSpec((rb, memory_dim), lambda i: (i, 0)),
                pl.BlockSpec((rb, raw_msg_dim), lambda i: (i, 0)),
                pl.BlockSpec((rb, time_dim), lambda i: (i, 0)),
            ],
            out_specs=pl.BlockSpec((rb, out_channels), lambda i: (i, 0)),
        ),
        compiler_params=pltpu.CompilerParams(
            # 1-D parallel grid -> shards across both TensorCores on v7x.
            dimension_semantics=("parallel",),
        ),
    )(z_src, z_dst, raw_msg, t_enc)


if __name__ == "__main__":
    # Small shapes consistent with TGN's message module.
    raw_msg_dim = 16
    memory_dim = 32
    time_dim = 8
    n_events = 100  # deliberately NOT a multiple of the row block / sublane

    key = jax.random.PRNGKey(0)
    k1, k2, k3, k4 = jax.random.split(key, 4)
    z_src = jax.random.normal(k1, (n_events, memory_dim), dtype=jnp.float32)
    z_dst = jax.random.normal(k2, (n_events, memory_dim), dtype=jnp.float32)
    raw_msg = jax.random.normal(k3, (n_events, raw_msg_dim), dtype=jnp.float32)
    t_enc = jax.random.normal(k4, (n_events, time_dim), dtype=jnp.float32)

    out = identity_message(z_src, z_dst, raw_msg, t_enc)
    out = jax.block_until_ready(out)

    # Reference check (pure JAX concat).
    ref = jnp.concatenate([z_src, z_dst, raw_msg, t_enc], axis=-1)
    assert out.shape == (n_events, raw_msg_dim + 2 * memory_dim + time_dim)
    assert out.dtype == ref.dtype
    assert jnp.array_equal(out, ref), "mismatch vs reference concat"

    print("KERNEL_OK")
</pallas_src>

<mosaic_0001>
module attributes {stable_mosaic.version = 11 : i64} {
  func.func @_identity_message_kernel(%arg0: i32, %arg1: memref<104x32xf32, #tpu.memory_space<vmem>>, %arg2: memref<104x32xf32, #tpu.memory_space<vmem>>, %arg3: memref<104x16xf32, #tpu.memory_space<vmem>>, %arg4: memref<104x8xf32, #tpu.memory_space<vmem>>, %arg5: memref<104x88xf32, #tpu.memory_space<vmem>>) attributes {dimension_semantics = [#tpu.dimension_semantics<parallel>], iteration_bounds = array<i64: 1>, scalar_prefetch = 0 : i64, scratch_operands = 0 : i64, tpu.core_type = #tpu.core_type<tc>, window_params = [{transform_indices = @transform_0, window_bounds = array<i64: 104, 32>}, {transform_indices = @transform_1, window_bounds = array<i64: 104, 32>}, {transform_indices = @transform_2, window_bounds = array<i64: 104, 16>}, {transform_indices = @transform_3, window_bounds = array<i64: 104, 8>}, {transform_indices = @transform_4, window_bounds = array<i64: 104, 88>}]} {
    %c0 = arith.constant 0 : index
    %c0_0 = arith.constant 0 : index
    %0 = vector.load %arg1[%c0, %c0_0] : memref<104x32xf32, #tpu.memory_space<vmem>>, vector<104x32xf32>
    %c0_1 = arith.constant 0 : index
    %c0_2 = arith.constant 0 : index
    %1 = vector.load %arg5[%c0_1, %c0_2] : memref<104x88xf32, #tpu.memory_space<vmem>>, vector<104x32xf32>
    tpu.vector_store %arg5[%c0_1, %c0_2], %0 {strides = array<i32>} : memref<104x88xf32, #tpu.memory_space<vmem>>, vector<104x32xf32>,
    %c0_3 = arith.constant 0 : index
    %c0_4 = arith.constant 0 : index
    %2 = vector.load %arg2[%c0_3, %c0_4] : memref<104x32xf32, #tpu.memory_space<vmem>>, vector<104x32xf32>
    %c0_5 = arith.constant 0 : index
    %c32 = arith.constant 32 : index
    %3 = vector.load %arg5[%c0_5, %c32] : memref<104x88xf32, #tpu.memory_space<vmem>>, vector<104x32xf32>
    tpu.vector_store %arg5[%c0_5, %c32], %2 {strides = array<i32>} : memref<104x88xf32, #tpu.memory_space<vmem>>, vector<104x32xf32>,
    %c0_6 = arith.constant 0 : index
    %c0_7 = arith.constant 0 : index
    %4 = vector.load %arg3[%c0_6, %c0_7] : memref<104x16xf32, #tpu.memory_space<vmem>>, vector<104x16xf32>
    %c0_8 = arith.constant 0 : index
    %c64 = arith.constant 64 : index
    %5 = vector.load %arg5[%c0_8, %c64] : memref<104x88xf32, #tpu.memory_space<vmem>>, vector<104x16xf32>
    tpu.vector_store %arg5[%c0_8, %c64], %4 {strides = array<i32>} : memref<104x88xf32, #tpu.memory_space<vmem>>, vector<104x16xf32>,
    %c0_9 = arith.constant 0 : index
    %c0_10 = arith.constant 0 : index
    %6 = vector.load %arg4[%c0_9, %c0_10] : memref<104x8xf32, #tpu.memory_space<vmem>>, vector<104x8xf32>
    %c0_11 = arith.constant 0 : index
    %c80 = arith.constant 80 : index
    %7 = vector.load %arg5[%c0_11, %c80] : memref<104x88xf32, #tpu.memory_space<vmem>>, vector<104x8xf32>
    tpu.vector_store %arg5[%c0_11, %c80], %6 {strides = array<i32>} : memref<104x88xf32, #tpu.memory_space<vmem>>, vector<104x8xf32>,
    return
  }
  func.func @transform_0(%arg0: i32) -> (i32, i32) {
    %c0_i32 = arith.constant 0 : i32
    %c0_i32_0 = arith.constant 0 : i32
    return %arg0, %c0_i32 : i32, i32
  }
  func.func @transform_1(%arg0: i32) -> (i32, i32) {
    %c0_i32 = arith.constant 0 : i32
    %c0_i32_0 = arith.constant 0 : i32
    return %arg0, %c0_i32 : i32, i32
  }
  func.func @transform_2(%arg0: i32) -> (i32, i32) {
    %c0_i32 = arith.constant 0 : i32
    %c0_i32_0 = arith.constant 0 : i32
    return %arg0, %c0_i32 : i32, i32
  }
  func.func @transform_3(%arg0: i32) -> (i32, i32) {
    %c0_i32 = arith.constant 0 : i32
    %c0_i32_0 = arith.constant 0 : i32
    return %arg0, %c0_i32 : i32, i32
  }
  func.func @transform_4(%arg0: i32) -> (i32, i32) {
    %c0_i32 = arith.constant 0 : i32
    %c0_i32_0 = arith.constant 0 : i32
    return %arg0, %c0_i32 : i32, i32
  }
}

</mosaic_0001>

<bundles_post_ra>
// kernel: tpu_custom_call.1
= control target key start
LH: loop header
LB: loop body
LE: loop exit
PB: predicated region body
PF: predicated region fallthrough
CT: control target
= control target key end

     0   :  { %s288_s19 = smov 32   ;;  %vm30_vm0 = vcmask 261120   ;;  %s289_s20 = smov 64   ;;  %vm109_vm1 = vcmask 523520   ;;  %vm188_vm2 = vcmask 654848   ;;  %vm267_vm3 = vcmask 720512   ;;  %s693_s1 = inlined_call_operand.vmem [shape: f32[100,32], index: 1, kind: input, shape index: {}]   ;;  %s694_s0 = inlined_call_operand.vmem [shape: f32[100,32], index: 0, kind: input, shape index: {}]   ;;  %s695_s4 = inlined_call_operand.vmem [shape: f32[100,88], index: 4, kind: output, shape index: {}]   ;;  %s696_s2 = inlined_call_operand.vmem [shape: f32[100,16], index: 2, kind: input, shape index: {}]   ;;  %s697_s3 = inlined_call_operand.vmem [shape: f32[100,8], index: 3, kind: input, shape index: {}]  }
   0x1   :  { %v44_v0 = vld [vmem:[%s693_s1] sm:$0xff]  ;;  %v46_v1 = vld [vmem:[%s693_s1 + $0x10] sm:$0xff]  ;;  %v45_v2 = vld [vmem:[%s693_s1 + $0x8] sm:$0xff]  ;;  %s290_s22 = smov 80  }
   0x2   :  { %70 = vrot.lane.b32.xlu0 %v44_v0, %s288_s19  ;;  %74 = vrot.lane.b32.xlu1 %v46_v1, %s288_s19  ;;  %v47_v3 = vld [vmem:[%s693_s1 + $0x18] sm:$0xff]  ;;  %v48_v4 = vld [vmem:[%s693_s1 + $0x20] sm:$0xff] }
   0x3   :  { %v49_v5 = vld [vmem:[%s693_s1 + $0x28] sm:$0xff]  ;;  %v50_v6 = vld [vmem:[%s693_s1 + $0x30] sm:$0xff]  ;;  %v51_v7 = vld [vmem:[%s693_s1 + $0x38] sm:$0xff] }
   0x4   :  { %v52_v8 = vld [vmem:[%s693_s1 + $0x40] sm:$0xff]  ;;  %v53_v9 = vld [vmem:[%s693_s1 + $0x48] sm:$0xff]  ;;  %v19_v11 = vld [vmem:[%s694_s0 + $0x10] sm:$0xff] }
   0x5   :  { %v17_v10 = vld [vmem:[%s694_s0] sm:$0xff]  ;;  %33 = vst.msk [vmem:[%s695_s4 + $0x10] sm:$0xff] %vm30_vm0, %v19_v11  ;;  %v18_v12 = vld [vmem:[%s694_s0 + $0x8] sm:$0xff]  ;;  %v20_v13 = vld [vmem:[%s694_s0 + $0x18] sm:$0xff] }
   0x6   :  { %72 = vrot.lane.b32.xlu0 %v45_v2, %s288_s19  ;;  %76 = vrot.lane.b32.xlu1 %v47_v3, %s288_s19  ;;  %31 = vst.msk [vmem:[%s695_s4] sm:$0xff] %vm30_vm0, %v17_v10  ;;  %v21_v14 = vld [vmem:[%s694_s0 + $0x20] sm:$0xff] }
   0x7   :  { %v54_v15 = vld [vmem:[%s693_s1 + $0x50] sm:$0xff]  ;;  %v55_v16 = vld [vmem:[%s693_s1 + $0x58] sm:$0xff]  ;;  %32 = vst.msk [vmem:[%s695_s4 + $0x8] sm:$0xff] %vm30_vm0, %v18_v12  ;;  %34 = vst.msk [vmem:[%s695_s4 + $0x18] sm:$0xff] %vm30_vm0, %v20_v13 }
   0x8   :  { %35 = vst.msk [vmem:[%s695_s4 + $0x20] sm:$0xff] %vm30_vm0, %v21_v14  ;;  %v22_v17 = vld [vmem:[%s694_s0 + $0x28] sm:$0xff]  ;;  %v23_v18 = vld [vmem:[%s694_s0 + $0x30] sm:$0xff]  ;;  %v24_v19 = vld [vmem:[%s694_s0 + $0x38] sm:$0xff] }
   0x9   :  { %36 = vst.msk [vmem:[%s695_s4 + $0x28] sm:$0xff] %vm30_vm0, %v22_v17  ;;  %37 = vst.msk [vmem:[%s695_s4 + $0x30] sm:$0xff] %vm30_vm0, %v23_v18  ;;  %v25_v20 = vld [vmem:[%s694_s0 + $0x40] sm:$0xff]  ;;  %v26_v21 = vld [vmem:[%s694_s0 + $0x48] sm:$0xff] }
   0xa   :  { %78 = vrot.lane.b32.xlu0 %v48_v4, %s288_s19  ;;  %80 = vrot.lane.b32.xlu1 %v49_v5, %s288_s19  ;;  %38 = vst.msk [vmem:[%s695_s4 + $0x38] sm:$0xff] %vm30_vm0, %v24_v19  ;;  %39 = vst.msk [vmem:[%s695_s4 + $0x40] sm:$0xff] %vm30_vm0, %v25_v20 }
   0xb   :  { %40 = vst.msk [vmem:[%s695_s4 + $0x48] sm:$0xff] %vm30_vm0, %v26_v21  ;;  %v27_v22 = vld [vmem:[%s694_s0 + $0x50] sm:$0xff]  ;;  %v28_v23 = vld [vmem:[%s694_s0 + $0x58] sm:$0xff]  ;;  %v29_v24 = vld [vmem:[%s694_s0 + $0x60] sm:$0xff] }
   0xc   :  { %41 = vst.msk [vmem:[%s695_s4 + $0x50] sm:$0xff] %vm30_vm0, %v27_v22  ;;  %42 = vst.msk [vmem:[%s695_s4 + $0x58] sm:$0xff] %vm30_vm0, %v28_v23  ;;  %v56_v25 = vld [vmem:[%s693_s1 + $0x60] sm:$0xff]  ;;  %v124_v27 = vld [vmem:[%s696_s2 + $0x8] sm:$0xff] }
   0xd   :  { %43 = vst.msk [vmem:[%s695_s4 + $0x60] sm:$0xff] %vm30_vm0, %v29_v24  ;;  %v123_v26 = vld [vmem:[%s696_s2] sm:$0xff]  ;;  %v125_v28 = vld [vmem:[%s696_s2 + $0x10] sm:$0xff]  ;;  %v126_v29 = vld [vmem:[%s696_s2 + $0x18] sm:$0xff] }
   0xe   :  { %82 = vrot.lane.b32.xlu0 %v50_v6, %s288_s19  ;;  %84 = vrot.lane.b32.xlu1 %v51_v7, %s288_s19  ;;  %v127_v30 = vld [vmem:[%s696_s2 + $0x20] sm:$0xff]  ;;  %v128_v31 = vld [vmem:[%s696_s2 + $0x28] sm:$0xff] }
   0xf   :  { %v129_v32 = vld [vmem:[%s696_s2 + $0x30] sm:$0xff]  ;;  %v130_v33 = vld [vmem:[%s696_s2 + $0x38] sm:$0xff]  ;;  %v131_v34 = vld [vmem:[%s696_s2 + $0x40] sm:$0xff] }
  0x10   :  { %v132_v35 = vld [vmem:[%s696_s2 + $0x48] sm:$0xff]  ;;  %v133_v36 = vld [vmem:[%s696_s2 + $0x50] sm:$0xff]  ;;  %v134_v37 = vld [vmem:[%s696_s2 + $0x58] sm:$0xff] }
  0x11   :  { %v135_v38 = vld [vmem:[%s696_s2 + $0x60] sm:$0xff]  ;;  %v203_v40 = vld [vmem:[%s697_s3 + $0x8] sm:$0xff]  ;;  %v204_v41 = vld [vmem:[%s697_s3 + $0x10] sm:$0xff] }
  0x12   :  { %86 = vrot.lane.b32.xlu0 %v52_v8, %s288_s19  ;;  %88 = vrot.lane.b32.xlu1 %v53_v9, %s288_s19  ;;  %v202_v39 = vld [vmem:[%s697_s3] sm:$0xff]  ;;  %v205_v42 = vld [vmem:[%s697_s3 + $0x18] sm:$0xff] }
  0x13   :  { %v206_v43 = vld [vmem:[%s697_s3 + $0x20] sm:$0xff]  ;;  %v207_v44 = vld [vmem:[%s697_s3 + $0x28] sm:$0xff]  ;;  %v208_v45 = vld [vmem:[%s697_s3 + $0x30] sm:$0xff] }
  0x14   :  { %v209_v46 = vld [vmem:[%s697_s3 + $0x38] sm:$0xff]  ;;  %v210_v47 = vld [vmem:[%s697_s3 + $0x40] sm:$0xff]  ;;  %v211_v48 = vld [vmem:[%s697_s3 + $0x48] sm:$0xff] }
  0x15   :  { %v212_v49 = vld [vmem:[%s697_s3 + $0x50] sm:$0xff]  ;;  %v213_v50 = vld [vmem:[%s697_s3 + $0x58] sm:$0xff]  ;;  %v214_v51 = vld [vmem:[%s697_s3 + $0x60] sm:$0xff] }
  0x16   :  { %90 = vrot.lane.b32.xlu0 %v54_v15, %s288_s19  ;;  %92 = vrot.lane.b32.xlu1 %v55_v16, %s288_s19 }
  0x1a   :  { %94 = vrot.lane.b32.xlu0 %v56_v25, %s288_s19  ;;  %149 = vrot.lane.b32.xlu1 %v123_v26, %s289_s20 }
  0x1e   :  { %151 = vrot.lane.b32.xlu0 %v124_v27, %s289_s20  ;;  %153 = vrot.lane.b32.xlu1 %v125_v28, %s289_s20 }
  0x22   :  { %155 = vrot.lane.b32.xlu0 %v126_v29, %s289_s20  ;;  %157 = vrot.lane.b32.xlu1 %v127_v30, %s289_s20 }
  0x26   :  { %159 = vrot.lane.b32.xlu0 %v128_v31, %s289_s20  ;;  %161 = vrot.lane.b32.xlu1 %v129_v32, %s289_s20 }
  0x2a   :  { %163 = vrot.lane.b32.xlu0 %v130_v33, %s289_s20  ;;  %165 = vrot.lane.b32.xlu1 %v131_v34, %s289_s20 }
  0x2e   :  { %167 = vrot.lane.b32.xlu0 %v132_v35, %s289_s20  ;;  %169 = vrot.lane.b32.xlu1 %v133_v36, %s289_s20 }
  0x32   :  { %171 = vrot.lane.b32.xlu0 %v134_v37, %s289_s20  ;;  %173 = vrot.lane.b32.xlu1 %v135_v38, %s289_s20 }
  0x36   :  { %228 = vrot.lane.b32.xlu0 %v202_v39, %s290_s22  ;;  %230 = vrot.lane.b32.xlu1 %v203_v40, %s290_s22 }
  0x3a   :  { %232 = vrot.lane.b32.xlu0 %v204_v41, %s290_s22  ;;  %234 = vrot.lane.b32.xlu1 %v205_v42, %s290_s22 }
  0x3e   :  { %236 = vrot.lane.b32.xlu0 %v206_v43, %s290_s22  ;;  %238 = vrot.lane.b32.xlu1 %v207_v44, %s290_s22 }
  0x42   :  { %240 = vrot.lane.b32.xlu0 %v208_v45, %s290_s22  ;;  %242 = vrot.lane.b32.xlu1 %v209_v46, %s290_s22 }
  0x46   :  { %244 = vrot.lane.b32.xlu0 %v210_v47, %s290_s22  ;;  %246 = vrot.lane.b32.xlu1 %v211_v48, %s290_s22 }
  0x4a   :  { %248 = vrot.lane.b32.xlu0 %v212_v49, %s290_s22  ;;  %250 = vrot.lane.b32.xlu1 %v213_v50, %s290_s22 }
  0x4e   :  { %252 = vrot.lane.b32.xlu0 %v214_v51, %s290_s22 }
  0x74   :  { %v71_v52 = vpop.permute.xlu0 %70  ;;  %v75_v53 = vpop.permute.xlu1 %74 }
  0x75   :  { %110 = vst.msk [vmem:[%s695_s4] sm:$0xff] %vm109_vm1, %v71_v52  ;;  %112 = vst.msk [vmem:[%s695_s4 + $0x10] sm:$0xff] %vm109_vm1, %v75_v53 }
  0x78   :  { %v73_v54 = vpop.permute.xlu0 %72  ;;  %v77_v55 = vpop.permute.xlu1 %76 }
  0x79   :  { %111 = vst.msk [vmem:[%s695_s4 + $0x8] sm:$0xff] %vm109_vm1, %v73_v54  ;;  %113 = vst.msk [vmem:[%s695_s4 + $0x18] sm:$0xff] %vm109_vm1, %v77_v55 }
  0x7c   :  { %v79_v56 = vpop.permute.xlu0 %78  ;;  %v81_v57 = vpop.permute.xlu1 %80 }
  0x7d   :  { %114 = vst.msk [vmem:[%s695_s4 + $0x20] sm:$0xff] %vm109_vm1, %v79_v56  ;;  %115 = vst.msk [vmem:[%s695_s4 + $0x28] sm:$0xff] %vm109_vm1, %v81_v57 }
  0x80   :  { %v83_v58 = vpop.permute.xlu0 %82  ;;  %v85_v59 = vpop.permute.xlu1 %84 }
  0x81   :  { %116 = vst.msk [vmem:[%s695_s4 + $0x30] sm:$0xff] %vm109_vm1, %v83_v58  ;;  %117 = vst.msk [vmem:[%s695_s4 + $0x38] sm:$0xff] %vm109_vm1, %v85_v59 }
  0x84   :  { %v87_v60 = vpop.permute.xlu0 %86  ;;  %v89_v61 = vpop.permute.xlu1 %88 }
  0x85   :  { %118 = vst.msk [vmem:[%s695_s4 + $0x40] sm:$0xff] %vm109_vm1, %v87_v60  ;;  %119 = vst.msk [vmem:[%s695_s4 + $0x48] sm:$0xff] %vm109_vm1, %v89_v61 }
  0x88   :  { %v91_v62 = vpop.permute.xlu0 %90  ;;  %v93_v63 = vpop.permute.xlu1 %92 }
  0x89   :  { %120 = vst.msk [vmem:[%s695_s4 + $0x50] sm:$0xff] %vm109_vm1, %v91_v62  ;;  %121 = vst.msk [vmem:[%s695_s4 + $0x58] sm:$0xff] %vm109_vm1, %v93_v63 }
  0x8c   :  { %v95_v0 = vpop.permute.xlu0 %94  ;;  %v150_v1 = vpop.permute.xlu1 %149 }
  0x8d   :  { %122 = vst.msk [vmem:[%s695_s4 + $0x60] sm:$0xff] %vm109_vm1, %v95_v0 }
  0x8e   :  { %189 = vst.msk [vmem:[%s695_s4] sm:$0xff] %vm188_vm2, %v150_v1 }
  0x90   :  { %v152_v2 = vpop.permute.xlu0 %151  ;;  %v154_v3 = vpop.permute.xlu1 %153 }
  0x91   :  { %190 = vst.msk [vmem:[%s695_s4 + $0x8] sm:$0xff] %vm188_vm2, %v152_v2  ;;  %191 = vst.msk [vmem:[%s695_s4 + $0x10] sm:$0xff] %vm188_vm2, %v154_v3 }
  0x94   :  { %v156_v4 = vpop.permute.xlu0 %155  ;;  %v158_v5 = vpop.permute.xlu1 %157 }
  0x95   :  { %192 = vst.msk [vmem:[%s695_s4 + $0x18] sm:$0xff] %vm188_vm2, %v156_v4  ;;  %193 = vst.msk [vmem:[%s695_s4 + $0x20] sm:$0xff] %vm188_vm2, %v158_v5 }
  0x98   :  { %v160_v6 = vpop.permute.xlu0 %159  ;;  %v162_v7 = vpop.permute.xlu1 %161 }
  0x99   :  { %194 = vst.msk [vmem:[%s695_s4 + $0x28] sm:$0xff] %vm188_vm2, %v160_v6  ;;  %195 = vst.msk [vmem:[%s695_s4 + $0x30] sm:$0xff] %vm188_vm2, %v162_v7 }
  0x9c   :  { %v164_v8 = vpop.permute.xlu0 %163  ;;  %v166_v9 = vpop.permute.xlu1 %165 }
  0x9d   :  { %196 = vst.msk [vmem:[%s695_s4 + $0x38] sm:$0xff] %vm188_vm2, %v164_v8  ;;  %197 = vst.msk [vmem:[%s695_s4 + $0x40] sm:$0xff] %vm188_vm2, %v166_v9 }
  0xa0   :  { %v168_v10 = vpop.permute.xlu0 %167  ;;  %v170_v11 = vpop.permute.xlu1 %169 }
  0xa1   :  { %198 = vst.msk [vmem:[%s695_s4 + $0x48] sm:$0xff] %vm188_vm2, %v168_v10  ;;  %199 = vst.msk [vmem:[%s695_s4 + $0x50] sm:$0xff] %vm188_vm2, %v170_v11 }
  0xa4   :  { %v172_v12 = vpop.permute.xlu0 %171  ;;  %v174_v13 = vpop.permute.xlu1 %173 }
  0xa5   :  { %200 = vst.msk [vmem:[%s695_s4 + $0x58] sm:$0xff] %vm188_vm2, %v172_v12  ;;  %201 = vst.msk [vmem:[%s695_s4 + $0x60] sm:$0xff] %vm188_vm2, %v174_v13 }
  0xa8   :  { %v229_v14 = vpop.permute.xlu0 %228  ;;  %v231_v15 = vpop.permute.xlu1 %230 }
  0xa9   :  { %268 = vst.msk [vmem:[%s695_s4] sm:$0xff] %vm267_vm3, %v229_v14  ;;  %269 = vst.msk [vmem:[%s695_s4 + $0x8] sm:$0xff] %vm267_vm3, %v231_v15 }
  0xac   :  { %v233_v16 = vpop.permute.xlu0 %232  ;;  %v235_v17 = vpop.permute.xlu1 %234 }
  0xad   :  { %270 = vst.msk [vmem:[%s695_s4 + $0x10] sm:$0xff] %vm267_vm3, %v233_v16  ;;  %271 = vst.msk [vmem:[%s695_s4 + $0x18] sm:$0xff] %vm267_vm3, %v235_v17 }
  0xb0   :  { %v237_v18 = vpop.permute.xlu0 %236  ;;  %v239_v19 = vpop.permute.xlu1 %238 }
  0xb1   :  { %272 = vst.msk [vmem:[%s695_s4 + $0x20] sm:$0xff] %vm267_vm3, %v237_v18  ;;  %273 = vst.msk [vmem:[%s695_s4 + $0x28] sm:$0xff] %vm267_vm3, %v239_v19 }
  0xb4   :  { %v241_v20 = vpop.permute.xlu0 %240  ;;  %v243_v21 = vpop.permute.xlu1 %242 }
  0xb5   :  { %274 = vst.msk [vmem:[%s695_s4 + $0x30] sm:$0xff] %vm267_vm3, %v241_v20  ;;  %275 = vst.msk [vmem:[%s695_s4 + $0x38] sm:$0xff] %vm267_vm3, %v243_v21 }
  0xb8   :  { %v245_v22 = vpop.permute.xlu0 %244  ;;  %v247_v23 = vpop.permute.xlu1 %246 }
  0xb9   :  { %276 = vst.msk [vmem:[%s695_s4 + $0x40] sm:$0xff] %vm267_vm3, %v245_v22  ;;  %277 = vst.msk [vmem:[%s695_s4 + $0x48] sm:$0xff] %vm267_vm3, %v247_v23 }
  0xbc   :  { %v249_v24 = vpop.permute.xlu0 %248  ;;  %v251_v25 = vpop.permute.xlu1 %250 }
  0xbd   :  { %278 = vst.msk [vmem:[%s695_s4 + $0x50] sm:$0xff] %vm267_vm3, %v249_v24  ;;  %279 = vst.msk [vmem:[%s695_s4 + $0x58] sm:$0xff] %vm267_vm3, %v251_v25 }
  0xc0   :  { %v253_v26 = vpop.permute.xlu0 %252 }
  0xc1   :  { %280 = vst.msk [vmem:[%s695_s4 + $0x60] sm:$0xff] %vm267_vm3, %v253_v26 }

</bundles_post_ra>
